<compile_context>
chip_gen: v7x
topology: tpu7x:2x2x1
jax: 0.10.0
libtpu: 0.0.40
codegen_flags: <defaults>
</compile_context>

<pallas_src>
import functools

import jax
import jax.numpy as jnp
from jax import lax
from jax.experimental import pallas as pl
from jax.experimental.pallas import tpu as pltpu


def _round_up(x, m):
    return ((x + m - 1) // m) * m


def _gram_kernel(xl_ref, xr_ref, gram_ref, *, inv_denom):
    """One grid step at (row-block i, contraction-block k).

    xl_ref   : (tm, tk) row-block tile of the features
    xr_ref   : (M,  tk) all-rows tile of the same features array
    gram_ref : (tm, M)  gram row-block, resident across the k axis (accumulator)
    """
    k = pl.program_id(1)

    @pl.when(k == 0)
    def _():
        gram_ref[...] = jnp.zeros_like(gram_ref)

    # Contract on the LAST dim of both operands: the MXU consumes the
    # "transposed" operand directly, no per-step XLU transpose of the tile.
    gram_ref[...] += lax.dot_general(
        xl_ref[...], xr_ref[...],
        dimension_numbers=(((1,), (1,)), ((), ())),
        preferred_element_type=jnp.float32,
    )

    @pl.when(k == pl.num_programs(1) - 1)
    def _():
        gram_ref[...] *= inv_denom            # divide by a*b*c*d (true, unpadded)


def _choose_tiles(M, K, elt_bytes):
    """Pick (tm, tk, num_k, K_pad) under a conservative VMEM budget.

    The budget (40 MiB) is derived for v7x (64 MiB physical VMEM) and is also
    comfortable on v5e/v6e once vmem_limit_bytes is raised explicitly.
    """
    # Row-block size: enables a megacore-parallel axis on v7x when M is large.
    tm = 256 if (M > 256 and M % 256 == 0) else M

    budget = 40 * 1024 * 1024
    cap = 128
    for cand in (2048, 1024, 512, 256, 128):
        need = 2 * (tm + M) * cand * elt_bytes + 2 * tm * M * 4
        if need <= budget:
            cap = cand
            break

    # Split K into num_k roughly equal 128-aligned tiles (bounded zero padding
    # instead of rejecting K not divisible by the tile).
    k128 = _round_up(max(K, 1), 128)
    num_k = -(-k128 // cap)
    tk = _round_up(-(-k128 // num_k), 128)
    return tm, tk, num_k, num_k * tk


def _gram_pallas(features, denom):
    """features: (M, K).  Returns the (M, M) float32 gram divided by `denom`."""
    M, K = features.shape
    elt = jnp.dtype(features.dtype).itemsize
    tm, tk, num_k, k_pad = _choose_tiles(M, K, elt)

    if k_pad != K:
        # Zero padding along K is mathematically free for the gram.
        features = jnp.pad(features, ((0, 0), (0, k_pad - K)))

    inv_denom = 1.0 / float(denom)
    kernel = functools.partial(_gram_kernel, inv_denom=inv_denom)

    vmem_need = 2 * (tm + M) * tk * elt + 2 * tm * M * 4
    vmem_limit = int(min(max(vmem_need + (8 << 20), 32 << 20), 56 << 20))

    gram = pl.pallas_call(
        kernel,
        out_shape=jax.ShapeDtypeStruct((M, M), jnp.float32),
        grid_spec=pltpu.PrefetchScalarGridSpec(
            num_scalar_prefetch=0,
            grid=(M // tm, num_k),
            in_specs=[
                pl.BlockSpec((tm, tk), lambda i, k: (i, k)),   # row block of F
                pl.BlockSpec((M, tk), lambda i, k: (0, k)),    # all rows of F
            ],
            out_specs=pl.BlockSpec((tm, M), lambda i, k: (i, 0)),
        ),
        compiler_params=pltpu.CompilerParams(
            dimension_semantics=("parallel", "arbitrary"),
            vmem_limit_bytes=vmem_limit,
        ),
    )(features, features)
    return gram


def _gram_from_nchw(in_feat):
    a, b, c, d = in_feat.shape
    # Keep the input dtype (bf16 stays bf16); f32 accumulation happens on the
    # MXU via preferred_element_type.
    feats = in_feat.reshape(a * b, c * d)
    return _gram_pallas(feats, a * b * c * d)


gram_matrix = jax.jit(_gram_from_nchw)


@jax.jit
def _style_loss(in_feat, target_gram):
    gram = _gram_from_nchw(in_feat)
    diff = gram - target_gram.astype(jnp.float32)
    return jnp.mean(diff * diff)          # F.mse_loss(reduction='mean') over M*M


class StyleLoss:
    """JAX/Pallas port of the PyTorch StyleLoss module (forward pass)."""

    def __init__(self, target_feature):
        self.target = jax.block_until_ready(gram_matrix(target_feature))
        self.loss = None

    def __call__(self, in_feat):
        self.loss = _style_loss(in_feat, self.target)
        return in_feat                     # identity pass-through, like PyTorch


if __name__ == "__main__":
    key = jax.random.PRNGKey(0)
    k_tgt, k_in = jax.random.split(key)

    # NCHW small shapes: batch=2, channels=4, spatial=16x16 -> features (8, 256)
    target_feature = jax.random.normal(k_tgt, (2, 4, 16, 16), dtype=jnp.float32)
    in_feat = jax.random.normal(k_in, (2, 4, 16, 16), dtype=jnp.float32)

    module = StyleLoss(target_feature)
    out = jax.block_until_ready(module(in_feat))
    loss = jax.block_until_ready(module.loss)

    # Plain-JAX reference (same semantics as the PyTorch code).
    def gram_ref(x):
        a, b, c, d = x.shape
        f = x.reshape(a * b, c * d).astype(jnp.float32)
        return (f @ f.T) / (a * b * c * d)

    g_tgt_ref = gram_ref(target_feature)
    g_in_ref = gram_ref(in_feat)
    loss_ref = jnp.mean((g_in_ref - g_tgt_ref) ** 2)

    assert out.shape == in_feat.shape
    assert jnp.allclose(out, in_feat)
    assert jnp.allclose(module.target, g_tgt_ref, atol=1e-5, rtol=1e-5)
    assert jnp.allclose(loss, loss_ref, atol=1e-6, rtol=1e-5)

    # Second check: H*W = 14*14 = 196 is NOT a multiple of 128 -> exercises
    # the zero-padding path (true denominator still a*b*c*d).
    x2 = jax.random.normal(jax.random.PRNGKey(1), (1, 8, 14, 14), dtype=jnp.float32)
    m2 = StyleLoss(x2 * 0.5)
    m2(x2)
    loss2 = jax.block_until_ready(m2.loss)
    loss2_ref = jnp.mean((gram_ref(x2) - gram_ref(x2 * 0.5)) ** 2)
    assert jnp.allclose(m2.target, gram_ref(x2 * 0.5), atol=1e-5, rtol=1e-5)
    assert jnp.allclose(loss2, loss2_ref, atol=1e-6, rtol=1e-5)

    print("KERNEL_OK")
</pallas_src>

<mosaic_0001>
module attributes {stable_mosaic.version = 11 : i64} {
  func.func @_gram_kernel(%arg0: i32, %arg1: i32, %arg2: memref<8x256xf32, #tpu.memory_space<vmem>>, %arg3: memref<8x256xf32, #tpu.memory_space<vmem>>, %arg4: memref<8x8xf32, #tpu.memory_space<vmem>>) attributes {dimension_semantics = [#tpu.dimension_semantics<parallel>, #tpu.dimension_semantics<arbitrary>], iteration_bounds = array<i64: 1, 1>, scalar_prefetch = 0 : i64, scratch_operands = 0 : i64, tpu.core_type = #tpu.core_type<tc>, window_params = [{transform_indices = @transform_0, window_bounds = array<i64: 8, 256>}, {transform_indices = @transform_1, window_bounds = array<i64: 8, 256>}, {transform_indices = @transform_2, window_bounds = array<i64: 8, 8>}]} {
    %c0_i32 = arith.constant 0 : i32
    %0 = arith.cmpi eq, %arg1, %c0_i32 : i32
    %1 = arith.extui %0 : i1 to i32
    %c0_i32_0 = arith.constant 0 : i32
    %2 = arith.cmpi ne, %1, %c0_i32_0 : i32
    scf.if %2 {
      %cst_10 = arith.constant 0.000000e+00 : f32
      %12 = vector.broadcast %cst_10 : f32 to vector<8x8xf32>
      %c0_11 = arith.constant 0 : index
      %c0_12 = arith.constant 0 : index
      %13 = vector.load %arg4[%c0_11, %c0_12] : memref<8x8xf32, #tpu.memory_space<vmem>>, vector<8x8xf32>
      tpu.vector_store %arg4[%c0_11, %c0_12], %12 {strides = array<i32>} : memref<8x8xf32, #tpu.memory_space<vmem>>, vector<8x8xf32>,
    } else {
    }
    %c0 = arith.constant 0 : index
    %c0_1 = arith.constant 0 : index
    %3 = vector.load %arg4[%c0, %c0_1] : memref<8x8xf32, #tpu.memory_space<vmem>>, vector<8x8xf32>
    %c0_2 = arith.constant 0 : index
    %c0_3 = arith.constant 0 : index
    %4 = vector.load %arg2[%c0_2, %c0_3] : memref<8x256xf32, #tpu.memory_space<vmem>>, vector<8x256xf32>
    %c0_4 = arith.constant 0 : index
    %c0_5 = arith.constant 0 : index
    %5 = vector.load %arg3[%c0_4, %c0_5] : memref<8x256xf32, #tpu.memory_space<vmem>>, vector<8x256xf32>
    %cst = arith.constant dense<0.000000e+00> : vector<8x8xf32>
    %6 = tpu.matmul %4, %5, %cst {dimension_numbers = #tpu.dot_dimension_numbers<[1], [1], [0], [0], [0, 0, 1, 0], [], []>} : vector<8x256xf32>, vector<8x256xf32>, vector<8x8xf32> -> vector<8x8xf32>
    %7 = arith.addf %3, %6 : vector<8x8xf32>
    %c0_6 = arith.constant 0 : index
    %c0_7 = arith.constant 0 : index
    %8 = vector.load %arg4[%c0_6, %c0_7] : memref<8x8xf32, #tpu.memory_space<vmem>>, vector<8x8xf32>
    tpu.vector_store %arg4[%c0_6, %c0_7], %7 {strides = array<i32>} : memref<8x8xf32, #tpu.memory_space<vmem>>, vector<8x8xf32>,
    %c0_i32_8 = arith.constant 0 : i32
    %9 = arith.cmpi eq, %arg1, %c0_i32_8 : i32
    %10 = arith.extui %9 : i1 to i32
    %c0_i32_9 = arith.constant 0 : i32
    %11 = arith.cmpi ne, %10, %c0_i32_9 : i32
    scf.if %11 {
      %c0_10 = arith.constant 0 : index
      %c0_11 = arith.constant 0 : index
      %12 = vector.load %arg4[%c0_10, %c0_11] : memref<8x8xf32, #tpu.memory_space<vmem>>, vector<8x8xf32>
      %cst_12 = arith.constant 4.8828125E-4 : f32
      %13 = vector.broadcast %cst_12 : f32 to vector<8x8xf32>
      %14 = arith.mulf %12, %13 : vector<8x8xf32>
      %c0_13 = arith.constant 0 : index
      %c0_14 = arith.constant 0 : index
      %15 = vector.load %arg4[%c0_13, %c0_14] : memref<8x8xf32, #tpu.memory_space<vmem>>, vector<8x8xf32>
      tpu.vector_store %arg4[%c0_13, %c0_14], %14 {strides = array<i32>} : memref<8x8xf32, #tpu.memory_space<vmem>>, vector<8x8xf32>,
    } else {
    }
    return
  }
  func.func @transform_0(%arg0: i32, %arg1: i32) -> (i32, i32) {
    %c0_i32 = arith.constant 0 : i32
    return %arg0, %arg1 : i32, i32
  }
  func.func @transform_1(%arg0: i32, %arg1: i32) -> (i32, i32) {
    %c0_i32 = arith.constant 0 : i32
    %c0_i32_0 = arith.constant 0 : i32
    return %c0_i32, %arg1 : i32, i32
  }
  func.func @transform_2(%arg0: i32, %arg1: i32) -> (i32, i32) {
    %c0_i32 = arith.constant 0 : i32
    %c0_i32_0 = arith.constant 0 : i32
    return %arg0, %c0_i32 : i32, i32
  }
}

</mosaic_0001>

<bundles_post_ra>
// kernel: _gram_from_nchw.1
= control target key start
LH: loop header
LB: loop body
LE: loop exit
PB: predicated region body
PF: predicated region fallthrough
CT: control target
= control target key end

     0   :  { %vm16_vm0 = vcmask 64512   ;;  %v142_v3 = vmov 0.0   ;;  %s186_s0 = inlined_call_operand.vmem [shape: f32[8,256], index: 0, kind: input, shape index: {}, may-alias: {0,1}]   ;;  %s187_s1 = inlined_call_operand.vmem [shape: f32[8,256], index: 1, kind: input, shape index: {}, may-alias: {0,1}]   ;;  %s188_s2 = inlined_call_operand.hbm [shape: f32[8,8], index: 2, kind: output, shape index: {}]  }
   0x1   :  { %v22_v0 = vld [vmem:[%s187_s1 + $0x8] sm:$0xff]  ;;  %v21_v1 = vld [vmem:[%s187_s1] sm:$0xff]  ;;  %17 = vst.msk [vmem:[#allocation2] sm:$0xff] %vm16_vm0, %v142_v3 }
   0x2   :  { %v20_v2 = vld [vmem:[%s186_s0 + $0x8] sm:$0xff]  ;;  %23 = vmatprep.subr.mxu0 %v22_v0 }
   0x3   :  { %87 = vmatprep.mubr.f32.mxu0 %v20_v2 }
   0x4   :  { %7 = vsyncpa [#allocation3], 0  ;;  %24 = vmatpush1.xpose.msra.mxu0 %v21_v1  ;;  %v19_v4 = vld [vmem:[%s186_s0] sm:$0xff]  ;;  %s143_s1 = smov [#allocation2]  }
   0x5   :  { %s108_s17 = sshll.u32 %s143_s1, 4  ;;  %s109_s17 = int_to_ptr.vmem [resolvable:$true] %s108_s17 }
   0x6   :  { %s118_s18 = scalar_lea.vmem %s109_s17, 128  ;;  %p123_p1 = scmp.lt.s32.totalorder %s109_s17, %s109_s17 }
   0x7   :  { %88 = vmatmul.mubr.f32.vlgmr.msra.gmra.mrb[0].mxu0 %v19_v4  ;;  %p119_p0 = scmp.ne.s32.totalorder %s109_s17, %s118_s18  ;;  %p124_p2 = scmp.lt.s32.totalorder %s118_s18, %s118_s18 }
   0x8   :  { %v18_v5 = vld [vmem:[#allocation2] sm:$0xff] }
   0x9   :  { %p125_p3 = por %p124_p2, %p123_p1 }
   0xb   :  { %p126_p4 = pnand %p125_p3, %p119_p0 }
  0xda   :  { %v89_v6 = vpop.f32.mrb[0].mxu0 }
  0xdb   :  { %v93_v7 = vadd.f32 %v89_v6, %v18_v5  ;;  %v91_v8 = vpop.f32.mrb[1].mxu0 }
  0xdd   :  { %95 = vst.msk [vmem:[#allocation2] sm:$0xff] %vm16_vm0, %v93_v7 }
  0xe4   :  { %v99_v9 = vld [vmem:[#allocation2] sm:$0xff] }
  0xe5   :  { %v100_v10 = vmul.f32 0.00048828125, %v99_v9 }
  0xe7   :  { %101 = vst.msk [vmem:[#allocation2] sm:$0xff] %vm16_vm0, %v100_v10 }
  0xe8   :  { %129 = shalt.err (!%p126_p4)
}
  0xe9   :  { %s130_s20 = scalar_lea.hbm %s188_s2, 128 }
  0xea   :  { %p131_p5 = scmp.ne.s32.totalorder %s188_s2, %s130_s20  ;;  %p134_p6 = scmp.lt.u32.totalorder %s130_s20, %s188_s2 }
  0xec   :  { %p136_p7 = pnand %p134_p6, %p131_p5 }
  0xee   :  { %139 = shalt.err (!%p136_p7)
}
  0xef   :  { %111 = dma.vmem_to_hbm [thread:$0]  %s109_s17, 128, %s188_s2, [#allocation3]  }
  0xf0   :  { %140 = dma.done.wait [#allocation3], 128  }
  0xf1   :  { %141 = vsyncadd [#allocation3], 4294967168 }
  0xf2   :  { %115 = vsyncpa [#allocation3], 1 }

</bundles_post_ra>
